<compile_context>
chip_gen: v6e
topology: v6e:2x2x1
jax: 0.10.0
libtpu: 0.0.40
codegen_flags: <defaults>
</compile_context>

<pallas_src>
import jax
import jax.numpy as jnp
from jax.experimental import pallas as pl
from jax.experimental.pallas import tpu as pltpu


def _round_up(x, m):
    return ((x + m - 1) // m) * m


def rbm_forward_kernel(v_ref, w_ref, bh_ref, u_ref, h_ref, acc_ref):
    k = pl.program_id(2)

    @pl.when(k == 0)
    def _init():
        acc_ref[...] = jnp.zeros_like(acc_ref)

    # MXU: bf16 x bf16 -> f32 accumulation.
    acc_ref[...] += jnp.dot(v_ref[...], w_ref[...],
                            preferred_element_type=jnp.float32)

    @pl.when(k == pl.num_programs(2) - 1)
    def _finalize():
        p_h = jax.nn.sigmoid(acc_ref[...] + bh_ref[...])   # EUP
        # Bernoulli(p): h = 1 iff u < p, u ~ U[0,1) supplied from the wrapper.
        h_ref[...] = (u_ref[...] < p_h).astype(h_ref.dtype)


def rbm_forward(v, W, bh, key, *, tm=256, tn=256, tk=512):
    """Pallas implementation of RBM.forward (hidden-unit sampling)."""
    B, V = v.shape
    Vw, H = W.shape
    assert V == Vw, "v / W shape mismatch"

    # Uniform randoms for the Bernoulli draw (generated once, outside the grid).
    u = jax.random.uniform(key, (B, H), dtype=jnp.float32)

    # Tile sizes: lane-aligned, shrunk for small problems.  Per-step VMEM with
    # double buffering stays well under the 32 MiB default scoped limit
    # (and the 64 MiB physical ceiling on v7x).
    TM = min(tm, _round_up(B, 16))     # 16: bf16 sublane packing for v
    TN = min(tn, _round_up(H, 128))
    TK = min(tk, _round_up(V, 128))

    Bp = _round_up(B, TM)
    Hp = _round_up(H, TN)
    Vp = _round_up(V, TK)

    # Zero-pad to tile multiples; padded K contributes 0 to the dot, padded
    # rows/cols are sliced off the output.
    v_p = jnp.zeros((Bp, Vp), jnp.bfloat16).at[:B, :V].set(v.astype(jnp.bfloat16))
    w_p = jnp.zeros((Vp, Hp), jnp.bfloat16).at[:V, :H].set(W.astype(jnp.bfloat16))
    bh_p = jnp.zeros((1, Hp), jnp.float32).at[0, :H].set(bh.astype(jnp.float32))
    u_p = jnp.ones((Bp, Hp), jnp.float32).at[:B, :H].set(u)

    grid = (Bp // TM, Hp // TN, Vp // TK)

    h_p = pl.pallas_call(
        rbm_forward_kernel,
        out_shape=jax.ShapeDtypeStruct((Bp, Hp), jnp.float32),
        grid=grid,
        in_specs=[
            pl.BlockSpec((TM, TK), lambda i, j, k: (i, k)),   # v  tile
            pl.BlockSpec((TK, TN), lambda i, j, k: (k, j)),   # W  tile
            pl.BlockSpec((1, TN), lambda i, j, k: (0, j)),    # bh tile
            pl.BlockSpec((TM, TN), lambda i, j, k: (i, j)),   # u  tile
        ],
        out_specs=pl.BlockSpec((TM, TN), lambda i, j, k: (i, j)),
        scratch_shapes=[pltpu.VMEM((TM, TN), jnp.float32)],   # f32 accumulator
        compiler_params=pltpu.CompilerParams(
            dimension_semantics=("parallel", "parallel", "arbitrary")),
    )(v_p, w_p, bh_p, u_p)

    return h_p[:B, :H]


# TODO(synk): RBM.backward (h @ W.T + bv sampling) is not implemented here; it
# would reuse the same kernel with W transposed and bv.

if __name__ == "__main__":
    key = jax.random.PRNGKey(0)
    k_w, k_v, k_u = jax.random.split(key, 3)

    batch = 8
    num_visible = 256
    num_hidden = 256

    # Deterministic parameter init mirroring RBM.__init__:
    #   W  ~ randn(num_visible, num_hidden), bv = zeros, bh = zeros.
    W = jax.random.normal(k_w, (num_visible, num_hidden), dtype=jnp.float32)
    bv = jnp.zeros((num_visible,), dtype=jnp.float32)  # noqa: F841 (unused in forward)
    bh = jnp.zeros((num_hidden,), dtype=jnp.float32)

    v = jax.random.normal(k_v, (batch, num_visible), dtype=jnp.float32)

    h = jax.block_until_ready(rbm_forward(v, W, bh, k_u))

    # Sanity: shape / dtype / strictly binary output.
    assert h.shape == (batch, num_hidden)
    assert h.dtype == jnp.float32
    assert bool(jnp.all((h == 0.0) | (h == 1.0)))

    # Reference check with the same uniforms (and matching bf16 matmul precision).
    u_ref = jax.random.uniform(k_u, (batch, num_hidden), dtype=jnp.float32)
    logits_ref = jnp.dot(v.astype(jnp.bfloat16), W.astype(jnp.bfloat16),
                         preferred_element_type=jnp.float32) + bh
    h_ref = (u_ref < jax.nn.sigmoid(logits_ref)).astype(jnp.float32)
    agree = float(jnp.mean((h == h_ref).astype(jnp.float32)))
    assert agree > 0.995, f"agreement with reference too low: {agree}"

    print("KERNEL_OK")
</pallas_src>

<mosaic_0001>
module attributes {stable_mosaic.version = 11 : i64} {
  func.func @rbm_forward_kernel(%arg0: i32, %arg1: i32, %arg2: i32, %arg3: memref<16x256xbf16, #tpu.memory_space<vmem>>, %arg4: memref<256x256xbf16, #tpu.memory_space<vmem>>, %arg5: memref<1x256xf32, #tpu.memory_space<vmem>>, %arg6: memref<16x256xf32, #tpu.memory_space<vmem>>, %arg7: memref<16x256xf32, #tpu.memory_space<vmem>>, %arg8: memref<16x256xf32, #tpu.memory_space<vmem>>) attributes {dimension_semantics = [#tpu.dimension_semantics<parallel>, #tpu.dimension_semantics<parallel>, #tpu.dimension_semantics<arbitrary>], iteration_bounds = array<i64: 1, 1, 1>, scalar_prefetch = 0 : i64, scratch_operands = 1 : i64, tpu.core_type = #tpu.core_type<tc>, window_params = [{transform_indices = @transform_0, window_bounds = array<i64: 16, 256>}, {transform_indices = @transform_1, window_bounds = array<i64: 256, 256>}, {transform_indices = @transform_2, window_bounds = array<i64: 1, 256>}, {transform_indices = @transform_3, window_bounds = array<i64: 16, 256>}, {transform_indices = @transform_4, window_bounds = array<i64: 16, 256>}]} {
    %c0_i32 = arith.constant 0 : i32
    %0 = arith.cmpi eq, %arg2, %c0_i32 : i32
    %1 = arith.extui %0 : i1 to i32
    %c0_i32_0 = arith.constant 0 : i32
    %2 = arith.cmpi ne, %1, %c0_i32_0 : i32
    scf.if %2 {
      %cst_10 = arith.constant 0.000000e+00 : f32
      %12 = vector.broadcast %cst_10 : f32 to vector<16x256xf32>
      %c0_11 = arith.constant 0 : index
      %c0_12 = arith.constant 0 : index
      %13 = vector.load %arg8[%c0_11, %c0_12] : memref<16x256xf32, #tpu.memory_space<vmem>>, vector<16x256xf32>
      tpu.vector_store %arg8[%c0_11, %c0_12], %12 {strides = array<i32>} : memref<16x256xf32, #tpu.memory_space<vmem>>, vector<16x256xf32>,
    } else {
    }
    %c0 = arith.constant 0 : index
    %c0_1 = arith.constant 0 : index
    %3 = vector.load %arg8[%c0, %c0_1] : memref<16x256xf32, #tpu.memory_space<vmem>>, vector<16x256xf32>
    %c0_2 = arith.constant 0 : index
    %c0_3 = arith.constant 0 : index
    %4 = vector.load %arg3[%c0_2, %c0_3] : memref<16x256xbf16, #tpu.memory_space<vmem>>, vector<16x256xbf16>
    %c0_4 = arith.constant 0 : index
    %c0_5 = arith.constant 0 : index
    %5 = vector.load %arg4[%c0_4, %c0_5] : memref<256x256xbf16, #tpu.memory_space<vmem>>, vector<256x256xbf16>
    %cst = arith.constant dense<0.000000e+00> : vector<16x256xf32>
    %6 = tpu.matmul %4, %5, %cst {dimension_numbers = #tpu.dot_dimension_numbers<[1], [0], [0], [1], [0, 0, 1, 1], [], []>} : vector<16x256xbf16>, vector<256x256xbf16>, vector<16x256xf32> -> vector<16x256xf32>
    %7 = arith.addf %3, %6 : vector<16x256xf32>
    %c0_6 = arith.constant 0 : index
    %c0_7 = arith.constant 0 : index
    %8 = vector.load %arg8[%c0_6, %c0_7] : memref<16x256xf32, #tpu.memory_space<vmem>>, vector<16x256xf32>
    tpu.vector_store %arg8[%c0_6, %c0_7], %7 {strides = array<i32>} : memref<16x256xf32, #tpu.memory_space<vmem>>, vector<16x256xf32>,
    %c0_i32_8 = arith.constant 0 : i32
    %9 = arith.cmpi eq, %arg2, %c0_i32_8 : i32
    %10 = arith.extui %9 : i1 to i32
    %c0_i32_9 = arith.constant 0 : i32
    %11 = arith.cmpi ne, %10, %c0_i32_9 : i32
    scf.if %11 {
      %c0_10 = arith.constant 0 : index
      %c0_11 = arith.constant 0 : index
      %12 = vector.load %arg8[%c0_10, %c0_11] : memref<16x256xf32, #tpu.memory_space<vmem>>, vector<16x256xf32>
      %c0_12 = arith.constant 0 : index
      %c0_13 = arith.constant 0 : index
      %13 = vector.load %arg5[%c0_12, %c0_13] : memref<1x256xf32, #tpu.memory_space<vmem>>, vector<1x256xf32>
      %14 = vector.broadcast %13 : vector<1x256xf32> to vector<16x256xf32>
      %15 = arith.addf %12, %14 : vector<16x256xf32>
      %16 = arith.negf %15 : vector<16x256xf32>
      %17 = math.exp %16 : vector<16x256xf32>
      %cst_14 = arith.constant 1.000000e+00 : f32
      %18 = vector.broadcast %cst_14 : f32 to vector<16x256xf32>
      %19 = arith.addf %18, %17 : vector<16x256xf32>
      %20 = arith.divf %18, %19 : vector<16x256xf32>
      %c0_15 = arith.constant 0 : index
      %c0_16 = arith.constant 0 : index
      %21 = vector.load %arg6[%c0_15, %c0_16] : memref<16x256xf32, #tpu.memory_space<vmem>>, vector<16x256xf32>
      %22 = arith.cmpf olt, %21, %20 : vector<16x256xf32>
      %23 = arith.extui %22 : vector<16x256xi1> to vector<16x256xi32>
      %24 = arith.sitofp %23 : vector<16x256xi32> to vector<16x256xf32>
      %c0_17 = arith.constant 0 : index
      %c0_18 = arith.constant 0 : index
      %25 = vector.load %arg7[%c0_17, %c0_18] : memref<16x256xf32, #tpu.memory_space<vmem>>, vector<16x256xf32>
      tpu.vector_store %arg7[%c0_17, %c0_18], %24 {strides = array<i32>} : memref<16x256xf32, #tpu.memory_space<vmem>>, vector<16x256xf32>,
    } else {
    }
    return
  }
  func.func @transform_0(%arg0: i32, %arg1: i32, %arg2: i32) -> (i32, i32) {
    %c0_i32 = arith.constant 0 : i32
    return %arg0, %arg2 : i32, i32
  }
  func.func @transform_1(%arg0: i32, %arg1: i32, %arg2: i32) -> (i32, i32) {
    %c0_i32 = arith.constant 0 : i32
    return %arg2, %arg1 : i32, i32
  }
  func.func @transform_2(%arg0: i32, %arg1: i32, %arg2: i32) -> (i32, i32) {
    %c0_i32 = arith.constant 0 : i32
    %c0_i32_0 = arith.constant 0 : i32
    return %c0_i32, %arg1 : i32, i32
  }
  func.func @transform_3(%arg0: i32, %arg1: i32, %arg2: i32) -> (i32, i32) {
    %c0_i32 = arith.constant 0 : i32
    return %arg0, %arg1 : i32, i32
  }
  func.func @transform_4(%arg0: i32, %arg1: i32, %arg2: i32) -> (i32, i32) {
    %c0_i32 = arith.constant 0 : i32
    return %arg0, %arg1 : i32, i32
  }
}

</mosaic_0001>

<bundles_post_ra>
// kernel: tpu_custom_call.1
= control target key start
LH: loop header
LB: loop body
LE: loop exit
PB: predicated region body
PF: predicated region fallthrough
CT: control target
= control target key end

     0   :  { %9 = vsyncpa [#allocation4], 0  ;;  %s670_s0 = inlined_call_operand.hbm [shape: bf16[16,256], index: 0, kind: input, shape index: {}]   ;;  %s671_s1 = inlined_call_operand.hbm [shape: bf16[256,256], index: 1, kind: input, shape index: {}]   ;;  %s672_s2 = inlined_call_operand.vmem [shape: f32[1,256], index: 2, kind: input, shape index: {}]   ;;  %s673_s3 = inlined_call_operand.hbm [shape: f32[16,256], index: 3, kind: input, shape index: {}]   ;;  %s674_s4 = inlined_call_operand.hbm [shape: f32[16,256], index: 4, kind: output, shape index: {}]  }
   0x1   :  { %10 = vsyncpa [#allocation7], 0 }
   0x2   :  { %11 = vsyncpa [#allocation5], 0  ;;  %s615_s15 = smov [#allocation6]   ;;  %s616_s17 = smov [#allocation3]  }
   0x3   :  { %s29_s16 = sshll.u32 %s615_s15, 4  ;;  %s17_s18 = sshll.u32 %s616_s17, 4  ;;  %s30_s16 = int_to_ptr.vmem [resolvable:$true] %s29_s16  ;;  %s18_s18 = int_to_ptr.vmem [resolvable:$true] %s17_s18 }
   0x4   :  { %s537_s19 = scalar_lea.vmem %s30_s16, 4096  ;;  %p542_p1 = scmp.lt.s32.totalorder %s30_s16, %s30_s16 }
   0x5   :  { %p538_p0 = scmp.ne.s32.totalorder %s30_s16, %s537_s19  ;;  %p543_p2 = scmp.lt.s32.totalorder %s537_s19, %s537_s19 }
   0x7   :  { %p544_p3 = por %p543_p2, %p542_p1 }
   0x9   :  { %p545_p4 = pnand %p544_p3, %p538_p0 }
   0xb   :  { %548 = shalt.err (!%p545_p4)
}
   0xc   :  { %s617_s20 = smov 128   ;;  %s618_s21 = smov 8  }
   0xd   :  { %35 = dma.hbm_to_vmem [thread:$0]  %s671_s1, 4096, %s30_s16, [#allocation7], %s617_s20, %s617_s20, %s618_s21  }
   0xe   :  { %s557_s24 = scalar_lea.vmem %s18_s18, 256  ;;  %p562_p6 = scmp.lt.s32.totalorder %s18_s18, %s18_s18 }
   0xf   :  { %p558_p5 = scmp.ne.s32.totalorder %s18_s18, %s557_s24  ;;  %p563_p7 = scmp.lt.s32.totalorder %s557_s24, %s557_s24 }
  0x11   :  { %p564_p8 = por %p563_p7, %p562_p6 }
  0x13   :  { %p565_p9 = pnand %p564_p8, %p558_p5 }
  0x15   :  { %568 = shalt.err (!%p565_p9)
}
  0x16   :  { %23 = dma.hbm_to_vmem [thread:$0]  %s670_s0, 256, %s18_s18, [#allocation4], %s617_s20, %s617_s20, %s618_s21  }
  0x17   :  { %s619_s27 = smov [#allocation8]  }
  0x18   :  { %s43_s28 = sshll.u32 %s619_s27, 4  ;;  %s44_s28 = int_to_ptr.vmem [resolvable:$true] %s43_s28 }
  0x19   :  { %s577_s29 = scalar_lea.vmem %s44_s28, 512  ;;  %p582_p11 = scmp.lt.s32.totalorder %s44_s28, %s44_s28 }
  0x1a   :  { %p578_p10 = scmp.ne.s32.totalorder %s44_s28, %s577_s29  ;;  %p583_p12 = scmp.lt.s32.totalorder %s577_s29, %s577_s29 }
  0x1c   :  { %p584_p13 = por %p583_p12, %p582_p11 }
  0x1e   :  { %p585_p0 = pnand %p584_p13, %p578_p10 }
  0x20   :  { %588 = shalt.err (!%p585_p0)
}
  0x21   :  { %s620_s1 = smov 256   ;;  %s621_s30 = smov 16  }
  0x22   :  { %49 = dma.hbm_to_vmem [thread:$0]  %s673_s3, 512, %s44_s28, [#allocation7], %s620_s1, %s620_s1, %s621_s30  }
  0x23   :  { %609 = dma.done.wait [#allocation4], 256  }
  0x24   :  { %610 = vsyncadd [#allocation4], 4294967040 }
  0x25   :  { %611 = dma.done.wait [#allocation7], 4608  }
  0x26   :  { %612 = vsyncadd [#allocation7], 4294962688  ;;  %v462_v0 = vld [vmem:[#allocation6 + $0x74] ss:$8 sps:$4 sm:$0xff]   ;;  %v464_v1 = vld [vmem:[#allocation6 + $0x70] ss:$8 sps:$4 sm:$0xff]   ;;  %v335_v34 = vlaneseq }
  0x27   :  { %275 = vmatprep.subr.bf16.mxu0 %v462_v0  ;;  %v465_v2 = vld [vmem:[#allocation6 + $0x64] ss:$8 sps:$4 sm:$0xff]   ;;  %v467_v3 = vld [vmem:[#allocation6 + $0x60] ss:$8 sps:$4 sm:$0xff]   ;;  %v468_v4 = vld [vmem:[#allocation6 + $0x54] ss:$8 sps:$4 sm:$0xff]  }
  0x28   :  { %276 = vmatpush1.bf16.msra.mxu0 %v464_v1  ;;  %v470_v5 = vld [vmem:[#allocation6 + $0x50] ss:$8 sps:$4 sm:$0xff]   ;;  %v471_v6 = vld [vmem:[#allocation6 + $0x44] ss:$8 sps:$4 sm:$0xff]   ;;  %v473_v7 = vld [vmem:[#allocation6 + $0x40] ss:$8 sps:$4 sm:$0xff]  }
  0x29   :  { %277 = vmatprep.subr.bf16.mxu0 %v465_v2  ;;  %v474_v8 = vld [vmem:[#allocation6 + $0x34] ss:$8 sps:$4 sm:$0xff]   ;;  %v476_v9 = vld [vmem:[#allocation6 + $0x30] ss:$8 sps:$4 sm:$0xff]   ;;  %v477_v10 = vld [vmem:[#allocation6 + $0x24] ss:$8 sps:$4 sm:$0xff]  }
  0x2a   :  { %v479_v11 = vld [vmem:[#allocation6 + $0x20] ss:$8 sps:$4 sm:$0xff]   ;;  %v480_v12 = vld [vmem:[#allocation6 + $0x14] ss:$8 sps:$4 sm:$0xff]   ;;  %v482_v14 = vld [vmem:[#allocation6 + $0x10] ss:$8 sps:$4 sm:$0xff]  }
  0x2b   :  { %v512_v13 = vld [vmem:[#allocation3 + $0x4] ss:$8 sps:$4 sm:$0xff]   ;;  %v483_v15 = vld [vmem:[#allocation6 + $0x4] ss:$8 sps:$4 sm:$0xff]   ;;  %v485_v16 = vld [vmem:[#allocation6] ss:$8 sps:$4 sm:$0xff]  }
  0x2c   :  { %278 = vmatpush1.bf16.msra.mxu0 %v467_v3  ;;  %307 = vmatprep.mubr.bf16.mxu0 %v512_v13  ;;  %v486_v17 = vld [vmem:[#allocation6 + $0xf4] ss:$8 sps:$4 sm:$0xff]   ;;  %v488_v18 = vld [vmem:[#allocation6 + $0xf0] ss:$8 sps:$4 sm:$0xff]   ;;  %v489_v19 = vld [vmem:[#allocation6 + $0xe4] ss:$8 sps:$4 sm:$0xff]  }
  0x2d   :  { %279 = vmatprep.subr.bf16.mxu0 %v468_v4  ;;  %v491_v20 = vld [vmem:[#allocation6 + $0xe0] ss:$8 sps:$4 sm:$0xff]   ;;  %v492_v21 = vld [vmem:[#allocation6 + $0xd4] ss:$8 sps:$4 sm:$0xff]   ;;  %v494_v22 = vld [vmem:[#allocation6 + $0xd0] ss:$8 sps:$4 sm:$0xff]  }
  0x2e   :  { %v495_v23 = vld [vmem:[#allocation6 + $0xc4] ss:$8 sps:$4 sm:$0xff]   ;;  %v497_v24 = vld [vmem:[#allocation6 + $0xc0] ss:$8 sps:$4 sm:$0xff]   ;;  %v498_v25 = vld [vmem:[#allocation6 + $0xb4] ss:$8 sps:$4 sm:$0xff]  }
  0x2f   :  { %v500_v26 = vld [vmem:[#allocation6 + $0xb0] ss:$8 sps:$4 sm:$0xff]   ;;  %v501_v27 = vld [vmem:[#allocation6 + $0xa4] ss:$8 sps:$4 sm:$0xff]   ;;  %v503_v28 = vld [vmem:[#allocation6 + $0xa0] ss:$8 sps:$4 sm:$0xff]  }
  0x30   :  { %280 = vmatpush1.bf16.msra.mxu0 %v470_v5  ;;  %v504_v29 = vld [vmem:[#allocation6 + $0x94] ss:$8 sps:$4 sm:$0xff]   ;;  %v506_v30 = vld [vmem:[#allocation6 + $0x90] ss:$8 sps:$4 sm:$0xff]   ;;  %v507_v31 = vld [vmem:[#allocation6 + $0x84] ss:$8 sps:$4 sm:$0xff]  }
  0x31   :  { %281 = vmatprep.subr.bf16.mxu0 %v471_v6  ;;  %v509_v32 = vld [vmem:[#allocation6 + $0x80] ss:$8 sps:$4 sm:$0xff]   ;;  %v510_v33 = vld [vmem:[#allocation3] ss:$8 sps:$4 sm:$0xff]   ;;  %v336_v35 = vshrl.u32 %v335_v34, 7  ;;  %v622_v2 = vmov 0.0  }
  0x32   :  { %v333_v37 = vld [vmem:[%s672_s2] sm:$0x3]  ;;  %v373_v61 = vld [vmem:[#allocation8] sm:$0xff]  ;;  %v374_v63 = vld [vmem:[#allocation8 + $0x8] sm:$0xff]  ;;  %s623_s2 = smov [#allocation9]  }
  0x33   :  { %v337_v36 = vsub.s32 0, %v336_v35  ;;  %v341_v38 = vsub.s32 1, %v336_v35  ;;  %v375_v1 = vld [vmem:[#allocation8 + $0x10] sm:$0xff]  ;;  %v376_v5 = vld [vmem:[#allocation8 + $0x18] sm:$0xff]  ;;  %s398_s7 = sshll.u32 %s623_s2, 4  ;;  %s399_s7 = int_to_ptr.vmem [resolvable:$true] %s398_s7 }
  0x34   :  { %282 = vmatpush1.bf16.msra.mxu0 %v473_v7  ;;  %s589_s8 = scalar_lea.vmem %s399_s7, 512  ;;  %p594_p2 = scmp.lt.s32.totalorder %s399_s7, %s399_s7 }
  0x35   :  { %283 = vmatprep.subr.bf16.mxu0 %v474_v8  ;;  %v338_v39 = vrot.slane %v333_v37, %v337_v36  ;;  %v342_v40 = vrot.slane %v333_v37, %v341_v38  ;;  %p590_p1 = scmp.ne.s32.totalorder %s399_s7, %s589_s8  ;;  %p595_p3 = scmp.lt.s32.totalorder %s589_s8, %s589_s8 }
  0x37   :  { %p596_p4 = por %p595_p3, %p594_p2 }
  0x38   :  { %284 = vmatpush1.bf16.msra.mxu0 %v476_v9 }
  0x39   :  { %285 = vmatprep.subr.bf16.mxu0 %v477_v10  ;;  %p597_p5 = pnand %p596_p4, %p590_p1 }
  0x3c   :  { %286 = vmatpush1.bf16.msra.mxu0 %v479_v11 }
  0x3d   :  { %287 = vmatprep.subr.bf16.mxu0 %v480_v12 }
  0x40   :  { %288 = vmatpush1.bf16.msra.mxu0 %v482_v14 }
  0x41   :  { %289 = vmatprep.subr.bf16.mxu0 %v483_v15 }
  0x44   :  { %290 = vmatpush1.bf16.msra.mxu0 %v485_v16 }
  0x45   :  { %291 = vmatprep.subr.bf16.mxu0 %v486_v17 }
  0x48   :  { %292 = vmatpush2.bf16.msra.mxu0 %v488_v18 }
  0x49   :  { %293 = vmatprep.subr.bf16.mxu0 %v489_v19 }
  0x4c   :  { %294 = vmatpush2.bf16.msra.mxu0 %v491_v20 }
  0x4d   :  { %295 = vmatprep.subr.bf16.mxu0 %v492_v21 }
  0x50   :  { %296 = vmatpush2.bf16.msra.mxu0 %v494_v22 }
  0x51   :  { %297 = vmatprep.subr.bf16.mxu0 %v495_v23 }
  0x54   :  { %298 = vmatpush2.bf16.msra.mxu0 %v497_v24 }
  0x55   :  { %299 = vmatprep.subr.bf16.mxu0 %v498_v25 }
  0x58   :  { %300 = vmatpush2.bf16.msra.mxu0 %v500_v26 }
  0x59   :  { %301 = vmatprep.subr.bf16.mxu0 %v501_v27 }
  0x5c   :  { %302 = vmatpush2.bf16.msra.mxu0 %v503_v28 }
  0x5d   :  { %303 = vmatprep.subr.bf16.mxu0 %v504_v29 }
  0x60   :  { %304 = vmatpush2.bf16.msra.mxu0 %v506_v30 }
  0x61   :  { %305 = vmatprep.subr.bf16.mxu0 %v507_v31 }
  0x64   :  { %306 = vmatpush2.bf16.msra.mxu0 %v509_v32 }
  0x67   :  { %308 = vmatmul.mubr.bf16.vlgmr.msra.gmra.mxu0 %v510_v33 }
 0x127   :  { %v309_v41 = vpop.f32.mrf.mxu0 }
 0x128   :  { %v345_v42 = vadd.f32 %v338_v39, %v309_v41 }
 0x129   :  { %v311_v43 = vpop.f32.mrf.mxu0 }
 0x12a   :  { %v445_v44 = vmul.f32 -1.442695, %v345_v42  ;;  %v346_v45 = vadd.f32 %v342_v40, %v311_v43 }
 0x12b   :  { %v313_v46 = vpop.f32.mrf.mxu0 }
 0x12c   :  { %513 = vpow2.f32 %v445_v44  ;;  %v446_v47 = vmul.f32 -1.442695, %v346_v45  ;;  %v347_v48 = vadd.f32 %v338_v39, %v313_v46 }
 0x12d   :  { %v315_v49 = vpop.f32.mrf.mxu0 }
 0x12e   :  { %515 = vpow2.f32 %v446_v47  ;;  %v447_v50 = vmul.f32 -1.442695, %v347_v48  ;;  %v348_v51 = vadd.f32 %v342_v40, %v315_v49 }
 0x130   :  { %517 = vpow2.f32 %v447_v50  ;;  %v448_v52 = vmul.f32 -1.442695, %v348_v51 }
 0x132   :  { %519 = vpow2.f32 %v448_v52 }
 0x139   :  { %v514_v53 = vpop.eup %513 }
 0x13a   :  { %v361_v54 = vadd.f32 1.0, %v514_v53 }
 0x13b   :  { %v516_v55 = vpop.eup %515 }
 0x13c   :  { %521 = vrcp.f32 %v361_v54  ;;  %v362_v56 = vadd.f32 1.0, %v516_v55 }
 0x13d   :  { %v518_v57 = vpop.eup %517 }
 0x13e   :  { %523 = vrcp.f32 %v362_v56  ;;  %v363_v58 = vadd.f32 1.0, %v518_v57 }
 0x13f   :  { %v520_v59 = vpop.eup %519 }
 0x140   :  { %525 = vrcp.f32 %v363_v58  ;;  %v364_v60 = vadd.f32 1.0, %v520_v59 }
 0x142   :  { %527 = vrcp.f32 %v364_v60 }
 0x149   :  { %v522_v62 = vpop.eup %521 }
 0x14a   :  { %vm377_vm0 = vcmp.lt.f32.partialorder %v373_v61, %v522_v62 }
 0x14b   :  { %v524_v0 = vpop.eup %523  ;;  %v449_v3 = vsel %vm377_vm0, 1.0, %v622_v2 }
 0x14c   :  { %vm378_vm1 = vcmp.lt.f32.partialorder %v374_v63, %v524_v0  ;;  %389 = vst [vmem:[#allocation9] sm:$0xff] %v449_v3 }
 0x14d   :  { %v526_v4 = vpop.eup %525  ;;  %v450_v6 = vsel %vm378_vm1, 1.0, %v622_v2 }
 0x14e   :  { %vm379_vm2 = vcmp.lt.f32.partialorder %v375_v1, %v526_v4  ;;  %390 = vst [vmem:[#allocation9 + $0x8] sm:$0xff] %v450_v6 }
 0x14f   :  { %v528_v7 = vpop.eup %527  ;;  %v451_v8 = vsel %vm379_vm2, 1.0, %v622_v2 }
 0x150   :  { %vm380_vm3 = vcmp.lt.f32.partialorder %v376_v5, %v528_v7  ;;  %391 = vst [vmem:[#allocation9 + $0x10] sm:$0xff] %v451_v8 }
 0x151   :  { %v452_v9 = vsel %vm380_vm3, 1.0, %v622_v2 }
 0x152   :  { %392 = vst [vmem:[#allocation9 + $0x18] sm:$0xff] %v452_v9 }
 0x153   :  { %600 = shalt.err (!%p597_p5)
}
 0x154   :  { %404 = dma.vmem_to_hbm [thread:$0]  %s399_s7, 512, %s674_s4, [#allocation5], %s620_s1, %s620_s1, %s621_s30  }
 0x155   :  { %613 = dma.done.wait [#allocation5], 512  }
 0x156   :  { %614 = vsyncadd [#allocation5], 4294966784 }
 0x157   :  { %408 = vsyncpa [#allocation4], 1 }
 0x158   :  { %409 = vsyncpa [#allocation7], 1 }
 0x159   :  { %410 = vsyncpa [#allocation5], 1 }

</bundles_post_ra>
